<compile_context>
chip_gen: v7x
topology: tpu7x:2x2x1
jax: 0.10.0
libtpu: 0.0.40
codegen_flags: <defaults>
</compile_context>

<pallas_src>
import functools

import jax
import jax.numpy as jnp
from jax import lax
from jax.experimental import pallas as pl
from jax.experimental.pallas import tpu as pltpu


def _round_up(n, m):
    return ((n + m - 1) // m) * m


# ----------------------------- Pallas kernels ------------------------------ #

def _agent_kernel_leaf(x_ref, wt_ref, bt_ref, w1_ref, b1_ref, w2t_ref, b2t_ref,
                       out_ref):
    cdt = wt_ref.dtype
    # x: (TB, T*D) in its HBM dtype (f32 or bf16); cast in-kernel (VPU, free-ish).
    tf = jnp.dot(x_ref[...].astype(cdt), wt_ref[...],
                 preferred_element_type=jnp.float32)
    tf = jnp.maximum(tf + bt_ref[...], 0.0)                        # (TB, 128) f32

    h = jnp.dot(tf.astype(cdt), w1_ref[...],
                preferred_element_type=jnp.float32)
    h = jnp.maximum(h + b1_ref[...], 0.0)                          # (TB, 128) f32

    # Transposed output: (A_pad, TB) = w2t (A_pad,128) contracted with h (TB,128)
    # along K=128 (rhs-transposed matmul, same class as q @ k.T).
    q_t = lax.dot_general(w2t_ref[...], h.astype(cdt),
                          dimension_numbers=(((1,), (1,)), ((), ())),
                          preferred_element_type=jnp.float32)      # (A_pad, TB)
    out_ref[...] = (q_t + b2t_ref[...]).astype(out_ref.dtype)


def _agent_kernel_nonleaf(x_ref, msg_ref, wt_ref, bt_ref, w1t_ref, w1m_ref,
                          b1_ref, w2t_ref, b2t_ref, out_ref):
    cdt = wt_ref.dtype
    tf = jnp.dot(x_ref[...].astype(cdt), wt_ref[...],
                 preferred_element_type=jnp.float32)
    tf = jnp.maximum(tf + bt_ref[...], 0.0)                        # (TB, 128) f32

    # concat([tf, msg]) @ w1  ==  tf @ w1_tf + msg @ w1_msg  (no lane concat)
    h = jnp.dot(tf.astype(cdt), w1t_ref[...],
                preferred_element_type=jnp.float32)
    h = h + jnp.dot(msg_ref[...].astype(cdt), w1m_ref[...],
                    preferred_element_type=jnp.float32)
    h = jnp.maximum(h + b1_ref[...], 0.0)                          # (TB, 128) f32

    q_t = lax.dot_general(w2t_ref[...], h.astype(cdt),
                          dimension_numbers=(((1,), (1,)), ((), ())),
                          preferred_element_type=jnp.float32)      # (A_pad, TB)
    out_ref[...] = (q_t + b2t_ref[...]).astype(out_ref.dtype)


# --------------------------- Parameter packing ------------------------------ #

def pack_params(params, *, seq_len, compute_dtype=jnp.bfloat16):
    """One-time re-layout of the raw params into kernel-friendly form.

    bf16 compute dtype is recommended on v5e/v6e/v7x alike (MXU-native bf16,
    f32 accumulation, f32 bias/ReLU). Use f32 for strict-accuracy needs.
    """
    T = seq_len
    wt = params["wt"]                                   # (D, 128)
    # Fold mean-over-time:  mean_t(x) @ wt == x.reshape(B, T*D) @ tile(wt/T, T)
    wt_flat = jnp.tile(wt / T, (T, 1)).astype(compute_dtype)       # (T*D, 128)

    w1 = params["w1"]                                   # (128 or 192, 128)
    w1_tf = w1[:128].astype(compute_dtype)              # (128, 128)
    w1_msg = w1[128:].astype(compute_dtype) if w1.shape[0] > 128 else None

    w2 = params["w2"]                                   # (128, A)
    a = w2.shape[1]
    a_pad = _round_up(max(a, 8), 8)
    w2t = jnp.pad(w2.T, ((0, a_pad - a), (0, 0))).astype(compute_dtype)   # (A_pad,128)
    b2t = jnp.pad(params["b2"].reshape(a, 1),
                  ((0, a_pad - a), (0, 0))).astype(jnp.float32)           # (A_pad,1)

    return dict(wt=wt_flat,
                bt=params["bt"].astype(jnp.float32),
                w1_tf=w1_tf, w1_msg=w1_msg,
                b1=params["b1"].astype(jnp.float32),
                w2t=w2t, b2t=b2t)


# ------------------------------ Wrapper ------------------------------------ #

@functools.partial(jax.jit, static_argnames=("action_dim", "tile_b"))
def hierarchical_agent_forward(packed, x, neighbor_msgs=None, *, action_dim,
                               tile_b=1024):
    """Forward pass of HierarchicalAgent.

    packed: output of pack_params().
    x: (B, T, D) float32 (or bf16).
    neighbor_msgs: optional (B, 64) array (non-leaf agents).
    returns: (B, action_dim) float32 Q-values.
    """
    B, T, D = x.shape
    TD = T * D
    x_flat = x.reshape(B, TD)      # view-style reshape only: no cast, no pad

    wt, bt = packed["wt"], packed["bt"]
    w1_tf, b1 = packed["w1_tf"], packed["b1"]
    w2t, b2t = packed["w2t"], packed["b2t"]
    a_pad = w2t.shape[0]

    # ---- Batch tiling (ragged tail handled by Pallas, not by padding). ----
    tb_cap = max(128, _round_up(tile_b, 128))
    if B <= tb_cap:
        tb = B                      # single block; block dims == full array dims
        grid_n = 1
    else:
        tb = tb_cap                 # multiple of 128 (lane-dense output blocks)
        grid_n = pl.cdiv(B, tb)
        # v7x: two TensorCores share the "parallel" batch axis; keep the grid
        # even when we can do so with a 128-multiple tile.
        if grid_n % 2 == 1:
            tb2 = _round_up(pl.cdiv(B, grid_n + 1), 128)
            if pl.cdiv(B, tb2) % 2 == 0:
                tb = tb2
                grid_n = pl.cdiv(B, tb)
    grid = (grid_n,)

    def batch_spec(width):          # streamed, tiled over batch
        return pl.BlockSpec((tb, width), lambda i: (i, 0))

    def const_spec(arr):            # VMEM-resident across all grid steps
        return pl.BlockSpec(arr.shape, lambda i: (0, 0))

    if neighbor_msgs is None:
        kernel = _agent_kernel_leaf
        args = (x_flat, wt, bt, w1_tf, b1, w2t, b2t)
        in_specs = [batch_spec(TD), const_spec(wt), const_spec(bt),
                    const_spec(w1_tf), const_spec(b1),
                    const_spec(w2t), const_spec(b2t)]
    else:
        w1_msg = packed["w1_msg"]
        msg = neighbor_msgs        # unpadded (B, 64); cast happens in-kernel
        kernel = _agent_kernel_nonleaf
        args = (x_flat, msg, wt, bt, w1_tf, w1_msg, b1, w2t, b2t)
        in_specs = [batch_spec(TD), batch_spec(msg.shape[1]), const_spec(wt),
                    const_spec(bt), const_spec(w1_tf), const_spec(w1_msg),
                    const_spec(b1), const_spec(w2t), const_spec(b2t)]

    cp_kwargs = dict(dimension_semantics=("parallel",))
    if tb >= 4096:                  # v5e scoped-VMEM default is 16 MiB
        cp_kwargs["vmem_limit_bytes"] = 32 * 1024 * 1024

    # Output is the transposed Q slab (A_pad, B): batch on the lane axis, so
    # the writeback is A_pad*4 bytes/row instead of a 128-wide padded slab.
    q_t = pl.pallas_call(
        kernel,
        out_shape=jax.ShapeDtypeStruct((a_pad, B), jnp.float32),
        grid=grid,
        in_specs=in_specs,
        out_specs=pl.BlockSpec((a_pad, tb), lambda i: (0, i)),
        compiler_params=pltpu.CompilerParams(**cp_kwargs),
    )(*args)

    return q_t[:action_dim].T       # (B, action_dim), tiny host-side transpose


# --------------------------- Parameter init -------------------------------- #

def init_params(key, input_dim, action_dim, agent_type="leaf"):
    """PyTorch-Linear-style uniform(-1/sqrt(fan_in), 1/sqrt(fan_in))."""
    q_input_dim = 128 if agent_type == "leaf" else 192
    ks = jax.random.split(key, 6)

    def lin(kw, kb, fan_in, fan_out):
        bound = 1.0 / jnp.sqrt(fan_in)
        w = jax.random.uniform(kw, (fan_in, fan_out), jnp.float32, -bound, bound)
        b = jax.random.uniform(kb, (1, fan_out), jnp.float32, -bound, bound)
        return w, b

    wt, bt = lin(ks[0], ks[1], input_dim, 128)       # TemporalFusion stand-in
    w1, b1 = lin(ks[2], ks[3], q_input_dim, 128)     # q_net[0]
    w2, b2 = lin(ks[4], ks[5], 128, action_dim)      # q_net[2]
    return dict(wt=wt, bt=bt, w1=w1, b1=b1, w2=w2, b2=b2)


# ---------------------------- Reference (JAX) ------------------------------- #

def _reference(params, x, neighbor_msgs=None):
    tf = jnp.maximum(jnp.mean(x, axis=1) @ params["wt"] + params["bt"], 0.0)
    combined = tf if neighbor_msgs is None else jnp.concatenate(
        [tf, neighbor_msgs], axis=-1)
    h = jnp.maximum(combined @ params["w1"] + params["b1"], 0.0)
    return h @ params["w2"] + params["b2"]


# --------------------------------- Main ------------------------------------ #

if __name__ == "__main__":
    key = jax.random.PRNGKey(0)
    k_leaf, k_non, k_x, k_msg, k_xl = jax.random.split(key, 5)

    B, T, D, A = 4, 8, 32, 8
    x = jax.random.normal(k_x, (B, T, D), jnp.float32)

    # ---- Leaf agent (neighbor_msgs=None), f32 strict path. ----
    p_leaf = init_params(k_leaf, D, A, agent_type="leaf")
    packed_leaf = pack_params(p_leaf, seq_len=T, compute_dtype=jnp.float32)
    q_leaf = jax.block_until_ready(
        hierarchical_agent_forward(packed_leaf, x, None, action_dim=A))
    ref_leaf = _reference(p_leaf, x, None)
    assert q_leaf.shape == (B, A)
    assert jnp.allclose(q_leaf, ref_leaf, atol=5e-4, rtol=5e-4)

    # ---- Non-leaf agent (128 temporal + 64 neighbor-msg = 192), f32 path. ----
    msgs = jax.random.normal(k_msg, (B, 64), jnp.float32)
    p_non = init_params(k_non, D, A, agent_type="coordinator")
    packed_non = pack_params(p_non, seq_len=T, compute_dtype=jnp.float32)
    q_non = jax.block_until_ready(
        hierarchical_agent_forward(packed_non, x, msgs, action_dim=A))
    ref_non = _reference(p_non, x, msgs)
    assert q_non.shape == (B, A)
    assert jnp.allclose(q_non, ref_non, atol=5e-4, rtol=5e-4)

    # ---- Larger batch: multi-step grid with ragged tail, bf16 weights. ----
    BL = 300   # tile_b=128 -> grid=3 with a masked partial last block
    x_large = jax.random.normal(k_xl, (BL, T, D), jnp.float32)
    packed_bf16 = pack_params(p_leaf, seq_len=T)     # bf16 default
    q_bf16 = jax.block_until_ready(
        hierarchical_agent_forward(packed_bf16, x_large, None,
                                   action_dim=A, tile_b=128))
    ref_large = _reference(p_leaf, x_large, None)
    assert q_bf16.shape == (BL, A)
    assert jnp.allclose(q_bf16, ref_large, atol=1e-1, rtol=1e-1)

    print("KERNEL_OK")
</pallas_src>

<mosaic_0001>
module attributes {stable_mosaic.version = 11 : i64} {
  func.func @_agent_kernel_leaf(%arg0: i32, %arg1: memref<4x256xf32, #tpu.memory_space<vmem>>, %arg2: memref<256x128xf32, #tpu.memory_space<vmem>>, %arg3: memref<1x128xf32, #tpu.memory_space<vmem>>, %arg4: memref<128x128xf32, #tpu.memory_space<vmem>>, %arg5: memref<1x128xf32, #tpu.memory_space<vmem>>, %arg6: memref<8x128xf32, #tpu.memory_space<vmem>>, %arg7: memref<8x1xf32, #tpu.memory_space<vmem>>, %arg8: memref<8x4xf32, #tpu.memory_space<vmem>>) attributes {dimension_semantics = [#tpu.dimension_semantics<parallel>], iteration_bounds = array<i64: 1>, scalar_prefetch = 0 : i64, scratch_operands = 0 : i64, tpu.core_type = #tpu.core_type<tc>, window_params = [{transform_indices = @transform_0, window_bounds = array<i64: 4, 256>}, {pipeline_mode = #tpu.pipeline_mode<synchronous>, transform_indices = @transform_1, window_bounds = array<i64: 256, 128>}, {pipeline_mode = #tpu.pipeline_mode<synchronous>, transform_indices = @transform_2, window_bounds = array<i64: 1, 128>}, {pipeline_mode = #tpu.pipeline_mode<synchronous>, transform_indices = @transform_3, window_bounds = array<i64: 128, 128>}, {pipeline_mode = #tpu.pipeline_mode<synchronous>, transform_indices = @transform_4, window_bounds = array<i64: 1, 128>}, {pipeline_mode = #tpu.pipeline_mode<synchronous>, transform_indices = @transform_5, window_bounds = array<i64: 8, 128>}, {pipeline_mode = #tpu.pipeline_mode<synchronous>, transform_indices = @transform_6, window_bounds = array<i64: 8, 1>}, {transform_indices = @transform_7, window_bounds = array<i64: 8, 4>}]} {
    %c0 = arith.constant 0 : index
    %c0_0 = arith.constant 0 : index
    %0 = vector.load %arg1[%c0, %c0_0] : memref<4x256xf32, #tpu.memory_space<vmem>>, vector<4x256xf32>
    %c0_1 = arith.constant 0 : index
    %c0_2 = arith.constant 0 : index
    %1 = vector.load %arg2[%c0_1, %c0_2] : memref<256x128xf32, #tpu.memory_space<vmem>>, vector<256x128xf32>
    %cst = arith.constant dense<0.000000e+00> : vector<4x128xf32>
    %2 = tpu.matmul %0, %1, %cst {dimension_numbers = #tpu.dot_dimension_numbers<[1], [0], [0], [1], [0, 0, 1, 1], [], []>} : vector<4x256xf32>, vector<256x128xf32>, vector<4x128xf32> -> vector<4x128xf32>
    %c0_3 = arith.constant 0 : index
    %c0_4 = arith.constant 0 : index
    %3 = vector.load %arg3[%c0_3, %c0_4] : memref<1x128xf32, #tpu.memory_space<vmem>>, vector<1x128xf32>
    %4 = vector.broadcast %3 : vector<1x128xf32> to vector<4x128xf32>
    %5 = arith.addf %2, %4 : vector<4x128xf32>
    %cst_5 = arith.constant 0.000000e+00 : f32
    %6 = vector.broadcast %cst_5 : f32 to vector<4x128xf32>
    %7 = arith.maximumf %5, %6 : vector<4x128xf32>
    %c0_6 = arith.constant 0 : index
    %c0_7 = arith.constant 0 : index
    %8 = vector.load %arg4[%c0_6, %c0_7] : memref<128x128xf32, #tpu.memory_space<vmem>>, vector<128x128xf32>
    %cst_8 = arith.constant dense<0.000000e+00> : vector<4x128xf32>
    %9 = tpu.matmul %7, %8, %cst_8 {dimension_numbers = #tpu.dot_dimension_numbers<[1], [0], [0], [1], [0, 0, 1, 1], [], []>} : vector<4x128xf32>, vector<128x128xf32>, vector<4x128xf32> -> vector<4x128xf32>
    %c0_9 = arith.constant 0 : index
    %c0_10 = arith.constant 0 : index
    %10 = vector.load %arg5[%c0_9, %c0_10] : memref<1x128xf32, #tpu.memory_space<vmem>>, vector<1x128xf32>
    %11 = vector.broadcast %10 : vector<1x128xf32> to vector<4x128xf32>
    %12 = arith.addf %9, %11 : vector<4x128xf32>
    %cst_11 = arith.constant 0.000000e+00 : f32
    %13 = vector.broadcast %cst_11 : f32 to vector<4x128xf32>
    %14 = arith.maximumf %12, %13 : vector<4x128xf32>
    %c0_12 = arith.constant 0 : index
    %c0_13 = arith.constant 0 : index
    %15 = vector.load %arg6[%c0_12, %c0_13] : memref<8x128xf32, #tpu.memory_space<vmem>>, vector<8x128xf32>
    %cst_14 = arith.constant dense<0.000000e+00> : vector<8x4xf32>
    %16 = tpu.matmul %15, %14, %cst_14 {dimension_numbers = #tpu.dot_dimension_numbers<[1], [1], [0], [0], [0, 0, 1, 0], [], []>} : vector<8x128xf32>, vector<4x128xf32>, vector<8x4xf32> -> vector<8x4xf32>
    %c0_15 = arith.constant 0 : index
    %c0_16 = arith.constant 0 : index
    %17 = vector.load %arg7[%c0_15, %c0_16] : memref<8x1xf32, #tpu.memory_space<vmem>>, vector<8x1xf32>
    %18 = vector.broadcast %17 : vector<8x1xf32> to vector<8x4xf32>
    %19 = arith.addf %16, %18 : vector<8x4xf32>
    %c0_17 = arith.constant 0 : index
    %c0_18 = arith.constant 0 : index
    %20 = vector.load %arg8[%c0_17, %c0_18] : memref<8x4xf32, #tpu.memory_space<vmem>>, vector<8x4xf32>
    tpu.vector_store %arg8[%c0_17, %c0_18], %19 {strides = array<i32>} : memref<8x4xf32, #tpu.memory_space<vmem>>, vector<8x4xf32>,
    return
  }
  func.func @transform_0(%arg0: i32) -> (i32, i32) {
    %c0_i32 = arith.constant 0 : i32
    %c0_i32_0 = arith.constant 0 : i32
    return %arg0, %c0_i32 : i32, i32
  }
  func.func @transform_1(%arg0: i32) -> (i32, i32) {
    %c0_i32 = arith.constant 0 : i32
    %c0_i32_0 = arith.constant 0 : i32
    %c0_i32_1 = arith.constant 0 : i32
    return %c0_i32, %c0_i32_0 : i32, i32
  }
  func.func @transform_2(%arg0: i32) -> (i32, i32) {
    %c0_i32 = arith.constant 0 : i32
    %c0_i32_0 = arith.constant 0 : i32
    %c0_i32_1 = arith.constant 0 : i32
    return %c0_i32, %c0_i32_0 : i32, i32
  }
  func.func @transform_3(%arg0: i32) -> (i32, i32) {
    %c0_i32 = arith.constant 0 : i32
    %c0_i32_0 = arith.constant 0 : i32
    %c0_i32_1 = arith.constant 0 : i32
    return %c0_i32, %c0_i32_0 : i32, i32
  }
  func.func @transform_4(%arg0: i32) -> (i32, i32) {
    %c0_i32 = arith.constant 0 : i32
    %c0_i32_0 = arith.constant 0 : i32
    %c0_i32_1 = arith.constant 0 : i32
    return %c0_i32, %c0_i32_0 : i32, i32
  }
  func.func @transform_5(%arg0: i32) -> (i32, i32) {
    %c0_i32 = arith.constant 0 : i32
    %c0_i32_0 = arith.constant 0 : i32
    %c0_i32_1 = arith.constant 0 : i32
    return %c0_i32, %c0_i32_0 : i32, i32
  }
  func.func @transform_6(%arg0: i32) -> (i32, i32) {
    %c0_i32 = arith.constant 0 : i32
    %c0_i32_0 = arith.constant 0 : i32
    %c0_i32_1 = arith.constant 0 : i32
    return %c0_i32, %c0_i32_0 : i32, i32
  }
  func.func @transform_7(%arg0: i32) -> (i32, i32) {
    %c0_i32 = arith.constant 0 : i32
    %c0_i32_0 = arith.constant 0 : i32
    return %c0_i32, %arg0 : i32, i32
  }
}

</mosaic_0001>

<bundles_post_ra>
// kernel: hierarchical_agent_forward.1
= control target key start
LH: loop header
LB: loop body
LE: loop exit
PB: predicated region body
PF: predicated region fallthrough
CT: control target
= control target key end

     0   :  { %12 = vsyncpa [#allocation3], 0  ;;  %s660_s0 = inlined_call_operand.vmem [shape: f32[4,256], index: 0, kind: input, shape index: {}]   ;;  %s661_s1 = inlined_call_operand.hbm [shape: f32[256,128], index: 1, kind: input, shape index: {}]   ;;  %s662_s2 = inlined_call_operand.vmem [shape: f32[1,128], index: 2, kind: input, shape index: {}]   ;;  %s663_s3 = inlined_call_operand.hbm [shape: f32[128,128], index: 3, kind: input, shape index: {}]   ;;  %s664_s4 = inlined_call_operand.vmem [shape: f32[1,128], index: 4, kind: input, shape index: {}]   ;;  %s665_s5 = inlined_call_operand.vmem [shape: f32[8,128], index: 5, kind: input, shape index: {}]   ;;  %s666_s6 = inlined_call_operand.vmem [shape: f32[8,1], index: 6, kind: input, shape index: {}]   ;;  %s667_s7 = inlined_call_operand.vmem [shape: f32[8,4], index: 7, kind: output, shape index: {}]  }
   0x1   :  { %13 = vsyncpa [#allocation5], 0  ;;  %s557_s24 = smov [#allocation2]   ;;  %s509_s28 = scalar_lea.hbm %s661_s1, 4096 }
   0x2   :  { %s21_s25 = sshll.u32 %s557_s24, 4  ;;  %p510_p0 = scmp.ne.s32.totalorder %s661_s1, %s509_s28  ;;  %s22_s25 = int_to_ptr.vmem [resolvable:$true] %s21_s25 }
   0x3   :  { %p513_p1 = scmp.lt.u32.totalorder %s509_s28, %s661_s1 }
   0x5   :  { %p515_p2 = pnand %p513_p1, %p510_p0 }
   0x7   :  { %518 = shalt.err (!%p515_p2)
}
   0x8   :  { %s519_s10 = scalar_lea.vmem %s22_s25, 4096  ;;  %p524_p4 = scmp.lt.s32.totalorder %s22_s25, %s22_s25 }
   0x9   :  { %p520_p3 = scmp.ne.s32.totalorder %s22_s25, %s519_s10  ;;  %p525_p5 = scmp.lt.s32.totalorder %s519_s10, %s519_s10 }
   0xb   :  { %p526_p6 = por %p525_p5, %p524_p4 }
   0xd   :  { %p527_p7 = pnand %p526_p6, %p520_p3 }
   0xf   :  { %530 = shalt.err (!%p527_p7)
}
  0x10   :  { %s558_s11 = smov 128   ;;  %s559_s12 = smov 8  }
  0x11   :  { %27 = dma.hbm_to_vmem [thread:$0]  %s661_s1, 4096, %s22_s25, [#allocation3], %s558_s11, %s558_s11, %s559_s12  }
  0x12   :  { %s560_s15 = smov [#allocation4]   ;;  %s531_s19 = scalar_lea.hbm %s663_s3, 2048 }
  0x13   :  { %s35_s16 = sshll.u32 %s560_s15, 4  ;;  %p532_p8 = scmp.ne.s32.totalorder %s663_s3, %s531_s19  ;;  %s36_s16 = int_to_ptr.vmem [resolvable:$true] %s35_s16 }
  0x14   :  { %p535_p9 = scmp.lt.u32.totalorder %s531_s19, %s663_s3 }
  0x16   :  { %p537_p10 = pnand %p535_p9, %p532_p8 }
  0x18   :  { %540 = shalt.err (!%p537_p10)
}
  0x19   :  { %s541_s24 = scalar_lea.vmem %s36_s16, 2048  ;;  %p546_p12 = scmp.lt.s32.totalorder %s36_s16, %s36_s16 }
  0x1a   :  { %p542_p11 = scmp.ne.s32.totalorder %s36_s16, %s541_s24  ;;  %p547_p13 = scmp.lt.s32.totalorder %s541_s24, %s541_s24 }
  0x1c   :  { %p548_p0 = por %p547_p13, %p546_p12 }
  0x1e   :  { %p549_p1 = pnand %p548_p0, %p542_p11 }
  0x20   :  { %552 = shalt.err (!%p549_p1)
}
  0x21   :  { %41 = dma.hbm_to_vmem [thread:$0]  %s663_s3, 2048, %s36_s16, [#allocation5], %s558_s11, %s558_s11, %s559_s12  }
  0x22   :  { %553 = dma.done.wait [#allocation3], 4096  }
  0x23   :  { %554 = vsyncadd [#allocation3], 4294963200 }
  0x24   :  { %555 = dma.done.wait [#allocation5], 2048  }
  0x25   :  { %556 = vsyncadd [#allocation5], 4294965248  ;;  %v561_v0 = vmov 0.0|0.0   ;;  %v71_v1 = vld [vmem:[#allocation2 + $0x80] sm:$0xff]  ;;  %v72_v2 = vld [vmem:[#allocation2 + $0x88] sm:$0xff]  ;;  %vm562_vm0 = vmmov 0  }
  0x26   :  { %475 = vmatprep.subr.bf16.mxu1 %v561_v0  ;;  %v55_v3 = vld [vmem:[#allocation2] sm:$0xff]  ;;  %v443_v4 = vpack.c.bf16 %v72_v2, %v71_v1  ;;  %v56_v5 = vld [vmem:[#allocation2 + $0x8] sm:$0xff]  ;;  %v73_v6 = vld [vmem:[#allocation2 + $0x90] sm:$0xff]  ;;  %vm339_vm1 = vcmask 31744  }
  0x27   :  { %v74_v7 = vld [vmem:[#allocation2 + $0x98] sm:$0xff]  ;;  %v445_v8 = vpack.c.bf16 %v56_v5, %v55_v3  ;;  %v57_v10 = vld [vmem:[#allocation2 + $0x10] sm:$0xff]  ;;  %v75_v12 = vld [vmem:[#allocation2 + $0xa0] sm:$0xff] }
  0x28   :  { %v447_v9 = vpack.c.bf16 %v74_v7, %v73_v6  ;;  %v58_v11 = vld [vmem:[#allocation2 + $0x18] sm:$0xff]  ;;  %444 = vmatprep.subr.bf16.mxu0 %v443_v4  ;;  %v76_v13 = vld [vmem:[#allocation2 + $0xa8] sm:$0xff]  ;;  %v59_v16 = vld [vmem:[#allocation2 + $0x20] sm:$0xff] }
  0x29   :  { %446 = vmatpush3.bf16.msra.mxu0 %v445_v8  ;;  %v449_v14 = vpack.c.bf16 %v58_v11, %v57_v10  ;;  %v451_v15 = vpack.c.bf16 %v76_v13, %v75_v12  ;;  %v60_v17 = vld [vmem:[#allocation2 + $0x28] sm:$0xff]  ;;  %v77_v18 = vld [vmem:[#allocation2 + $0xb0] sm:$0xff]  ;;  %v78_v19 = vld [vmem:[#allocation2 + $0xb8] sm:$0xff]  ;;  %v563_v12 = vmov 0.0  }
  0x2a   :  { %448 = vmatprep.subr.bf16.mxu0 %v447_v9  ;;  %v453_v20 = vpack.c.bf16 %v60_v17, %v59_v16  ;;  %v455_v21 = vpack.c.bf16 %v78_v19, %v77_v18  ;;  %v61_v22 = vld [vmem:[#allocation2 + $0x30] sm:$0xff]  ;;  %v62_v23 = vld [vmem:[#allocation2 + $0x38] sm:$0xff]  ;;  %v79_v24 = vld [vmem:[#allocation2 + $0xc0] sm:$0xff]  ;;  %435 = vmatprep.mubr.msk.f32.mxu1 %vm562_vm0, %v563_v12  ;;  %v564_v19 = vmov 0  }
  0x2b   :  { %v80_v25 = vld [vmem:[#allocation2 + $0xc8] sm:$0xff]  ;;  %v633_v26 = vld [vmem:[%s660_s0] sm:$0xff]  ;;  %v170_v30 = vld [vmem:[#allocation4 + $0x10] sm:$0xff]  ;;  %v457_v31 = vpack.c.bf16 %v62_v23, %v61_v22  ;;  %507 = vset.pattern.permute.xlu0 %v564_v19 }
  0x2c   :  { %v95_v27 = vcombine.high %v633_v26, %v633_v26  ;;  %v168_v28 = vld [vmem:[#allocation4] sm:$0xff]  ;;  %v169_v29 = vld [vmem:[#allocation4 + $0x8] sm:$0xff]  ;;  %v171_v33 = vld [vmem:[#allocation4 + $0x18] sm:$0xff]  ;;  %v459_v34 = vpack.c.bf16 %v80_v25, %v79_v24 }
  0x2d   :  { %450 = vmatpush3.bf16.msra.mxu0 %v449_v14  ;;  %v476_v32 = vpack.c.bf16 %v169_v29, %v168_v28  ;;  %v63_v35 = vld [vmem:[#allocation2 + $0x40] sm:$0xff]  ;;  %v64_v36 = vld [vmem:[#allocation2 + $0x48] sm:$0xff]  ;;  %v81_v37 = vld [vmem:[#allocation2 + $0xd0] sm:$0xff]  ;;  %v479_v39 = vpack.c.bf16 %v171_v33, %v170_v30 }
  0x2e   :  { %452 = vmatprep.subr.bf16.mxu0 %v451_v15  ;;  %161 = vmatprep.mubr.f32.mxu0 %v95_v27  ;;  %v82_v38 = vld [vmem:[#allocation2 + $0xd8] sm:$0xff]  ;;  %v172_v40 = vld [vmem:[#allocation4 + $0x20] sm:$0xff]  ;;  %v173_v41 = vld [vmem:[#allocation4 + $0x28] sm:$0xff]  ;;  %v461_v42 = vpack.c.bf16 %v64_v36, %v63_v35 }
  0x2f   :  { %477 = vmatpush3.bf16.msra.mxu1 %v476_v32  ;;  %v463_v43 = vpack.c.bf16 %v82_v38, %v81_v37  ;;  %v65_v44 = vld [vmem:[#allocation2 + $0x50] sm:$0xff]  ;;  %v66_v45 = vld [vmem:[#allocation2 + $0x58] sm:$0xff]  ;;  %v83_v46 = vld [vmem:[#allocation2 + $0xe0] sm:$0xff]  ;;  %v482_v48 = vpack.c.bf16 %v173_v41, %v172_v40 }
  0x30   :  { %478 = vmatprep.subr.bf16.mxu1 %v561_v0  ;;  %v84_v47 = vld [vmem:[#allocation2 + $0xe8] sm:$0xff]  ;;  %v174_v49 = vld [vmem:[#allocation4 + $0x30] sm:$0xff]  ;;  %v175_v50 = vld [vmem:[#allocation4 + $0x38] sm:$0xff]  ;;  %v465_v51 = vpack.c.bf16 %v66_v45, %v65_v44 }
  0x31   :  { %454 = vmatpush3.bf16.msra.mxu0 %v453_v20  ;;  %v467_v52 = vpack.c.bf16 %v84_v47, %v83_v46  ;;  %v67_v53 = vld [vmem:[#allocation2 + $0x60] sm:$0xff]  ;;  %v68_v54 = vld [vmem:[#allocation2 + $0x68] sm:$0xff]  ;;  %v85_v55 = vld [vmem:[#allocation2 + $0xf0] sm:$0xff]  ;;  %v485_v57 = vpack.c.bf16 %v175_v50, %v174_v49 }
  0x32   :  { %456 = vmatprep.subr.bf16.mxu0 %v455_v21  ;;  %v86_v56 = vld [vmem:[#allocation2 + $0xf8] sm:$0xff]  ;;  %v176_v58 = vld [vmem:[#allocation4 + $0x40] sm:$0xff]  ;;  %v177_v59 = vld [vmem:[#allocation4 + $0x48] sm:$0xff]  ;;  %v469_v60 = vpack.c.bf16 %v68_v54, %v67_v53 }
  0x33   :  { %480 = vmatpush3.bf16.msra.mxu1 %v479_v39  ;;  %v471_v61 = vpack.c.bf16 %v86_v56, %v85_v55  ;;  %v69_v62 = vld [vmem:[#allocation2 + $0x70] sm:$0xff]  ;;  %v70_v63 = vld [vmem:[#allocation2 + $0x78] sm:$0xff]  ;;  %v488_v1 = vpack.c.bf16 %v177_v59, %v176_v58  ;;  %v180_v6 = vld [vmem:[#allocation4 + $0x60] sm:$0xff] }
  0x34   :  { %481 = vmatprep.subr.bf16.mxu1 %v561_v0  ;;  %v178_v2 = vld [vmem:[#allocation4 + $0x50] sm:$0xff]  ;;  %v179_v3 = vld [vmem:[#allocation4 + $0x58] sm:$0xff]  ;;  %v473_v4 = vpack.c.bf16 %v70_v63, %v69_v62  ;;  %v181_v7 = vld [vmem:[#allocation4 + $0x68] sm:$0xff] }
  0x35   :  { %458 = vmatpush3.bf16.msra.mxu0 %v457_v31  ;;  %v491_v5 = vpack.c.bf16 %v179_v3, %v178_v2  ;;  %v494_v8 = vpack.c.bf16 %v181_v7, %v180_v6  ;;  %v182_v9 = vld [vmem:[#allocation4 + $0x70] sm:$0xff]  ;;  %v183_v10 = vld [vmem:[#allocation4 + $0x78] sm:$0xff]  ;;  %v347_v14 = vld [vmem:[%s662_s2] ss:$0 sm:$0xff] }
  0x36   :  { %460 = vmatprep.subr.bf16.mxu0 %v459_v34  ;;  %v497_v11 = vpack.c.bf16 %v183_v10, %v182_v9  ;;  %v348_v20 = vld [vmem:[%s664_s4] ss:$0 sm:$0xff] }
  0x37   :  { %483 = vmatpush3.bf16.msra.mxu1 %v482_v48  ;;  %v262_v25 = vld [vmem:[%s665_s5] sm:$0xff] }
  0x38   :  { %484 = vmatprep.subr.bf16.mxu1 %v561_v0 }
  0x39   :  { %462 = vmatpush3.bf16.msra.mxu0 %v461_v42 }
  0x3a   :  { %464 = vmatprep.subr.bf16.mxu0 %v463_v43 }
  0x3b   :  { %486 = vmatpush3.bf16.msra.mxu1 %v485_v57 }
  0x3c   :  { %487 = vmatprep.subr.bf16.mxu1 %v561_v0 }
  0x3d   :  { %466 = vmatpush3.bf16.msra.mxu0 %v465_v51 }
  0x3e   :  { %468 = vmatprep.subr.bf16.mxu0 %v467_v52 }
  0x3f   :  { %489 = vmatpush3.bf16.msra.mxu1 %v488_v1 }
  0x40   :  { %490 = vmatprep.subr.bf16.mxu1 %v561_v0 }
  0x41   :  { %470 = vmatpush3.bf16.msra.mxu0 %v469_v60 }
  0x42   :  { %472 = vmatprep.subr.bf16.mxu0 %v471_v61 }
  0x43   :  { %492 = vmatpush3.bf16.msra.mxu1 %v491_v5 }
  0x44   :  { %493 = vmatprep.subr.bf16.mxu1 %v561_v0 }
  0x45   :  { %474 = vmatpush3.bf16.msra.mxu0 %v473_v4 }
  0x46   :  { %438 = vmatprep.subr.mxu0 %v563_v12 }
  0x47   :  { %495 = vmatpush3.bf16.msra.mxu1 %v494_v8 }
  0x48   :  { %162 = vmatmul.mubr.f32.vlgmr.msra.gmra.mrb[0].mxu0 %v633_v26  ;;  %496 = vmatprep.subr.bf16.mxu1 %v561_v0  ;;  %v263_v0 = vld [vmem:[%s666_s6] sm:$0xff] }
  0x49   :  { %440 = vmatprep.mubr.msk.f32.mxu0 %vm562_vm0, %v563_v12  ;;  %266 = vperm.xlu0 %507, %v263_v0  }
  0x4b   :  { %498 = vmatpush3.bf16.msra.mxu1 %v497_v11 }
  0xc8   :  { %v267_v26 = vpop.permute.xlu0 %266 }
 0x11b   :  { %v381_v13 = vpop.f32.mrb[0].mxu0 }
 0x11c   :  { %v382_v15 = vpop.f32.mrb[1].mxu0 }
 0x11d   :  { %v383_v16 = vadd.f32 %v382_v15, %v381_v13 }
 0x11f   :  { %v164_v17 = vadd.f32 %v383_v16, %v347_v14 }
 0x121   :  { %v167_v18 = vmax.f32 %v164_v17, 0.0 }
 0x123   :  { %436 = vmatmul.mubr.f32.vlgmr.msra.gmra.mrb[0].mxu1 %v167_v18 }
 0x1f6   :  { %v257_v21 = vpop.f32.mrb[0].mxu1 }
 0x1f7   :  { %v258_v22 = vadd.f32 %v348_v20, %v257_v21  ;;  %v437_v23 = vpop.f32.mrb[1].mxu1 }
 0x1f9   :  { %v261_v24 = vmax.f32 %v258_v22, 0.0 }
 0x1fb   :  { %439 = vmatpush3.xpose.msra.mxu0 %v261_v24 }
 0x1fe   :  { %441 = vmatmul.mubr.f32.vlgmr.msra.gmra.mrb[2].mxu0 %v262_v25 }
 0x2d1   :  { %v335_v27 = vpop.f32.mrb[2].mxu0 }
 0x2d2   :  { %v336_v28 = vadd.f32 %v335_v27, %v267_v26  ;;  %v442_v29 = vpop.f32.mrb[3].mxu0 }
 0x2d4   :  { %340 = vst.msk [vmem:[%s667_s7] sm:$0xff] %vm339_vm1, %v336_v28 }
 0x2d5   :  { %345 = vsyncpa [#allocation3], 1 }
 0x2d6   :  { %346 = vsyncpa [#allocation5], 1 }

</bundles_post_ra>
